<compile_context>
chip_gen: v5e
topology: v5e:2x2
jax: 0.10.0
libtpu: 0.0.40
codegen_flags: <defaults>
</compile_context>

<pallas_src>
import jax
import jax.numpy as jnp
import numpy as np
from jax.experimental import pallas as pl
from jax.experimental.pallas import tpu as pltpu


def _make_conv3x3_kernel(H, W, Cs, Cout, nb, n_out, col_stride):
    """3x3 'same' conv on `nb` pre-padded images via one folded MXU matmul."""
    Wp = W + 2

    def kernel(x_ref, w_ref, o_ref, patch_ref):
        # x_ref:     (nb, Cs, L)            bf16, zero-padded flat images
        # w_ref:     (Cout, 9*Cs)           bf16, folded 3x3 weights
        # o_ref:     (nb, Cout, col_stride) conv output (junk cols dropped outside)
        # patch_ref: (9*Cs, nb*col_stride)  bf16 scratch, folded im2col patches

        # 1) Folded im2col: tap (dy, dx) of image i is ONE contiguous lane
        #    slice of the pre-padded input; the destination row block t*Cs is
        #    sublane-aligned (Cs == 8) and all Cs rows are written (padded
        #    channels carry real zeros) -> no per-row masked halo stores, no
        #    sublane-misaligned tap stores, no in-kernel casts.
        for i in range(nb):
            base = i * col_stride
            for t in range(9):
                dy, dx = divmod(t, 3)
                off = dy * Wp + dx
                patch_ref[t * Cs:(t + 1) * Cs, base:base + n_out] = (
                    x_ref[i, :, off:off + n_out])

        # 2) Single bf16 MXU matmul (K = 9*Cs), f32 accumulation, lane-dense
        #    output store.  Kept as ONE folded matmul (review item 10).
        # TODO(synk): chunk the lane dimension / accumulate into a VMEM f32
        #   scratch once large row strips make this result exceed the vregs.
        acc = jnp.dot(w_ref[...], patch_ref[...],
                      preferred_element_type=jnp.float32)
        for i in range(nb):
            o_ref[i] = acc[:, i * col_stride:(i + 1) * col_stride].astype(
                o_ref.dtype)

    return kernel


def conv3x3_same(x_nchw, w_oihw, *, out_dtype=jnp.float32,
                 images_per_block=None):
    """3x3 conv, stride 1, padding 1, no bias.

    x: (N, Cin, H, W); w: (Cout, Cin, 3, 3).  Returns (N, Cout, H, W).
    """
    N, Cin, H, W = x_nchw.shape
    Cout = w_oihw.shape[0]
    Hp, Wp = H + 2, W + 2
    n_out = H * Wp                       # output cols incl. 2 junk cols/row
    Cs = 8 * pl.cdiv(Cin, 8)             # channels padded to a sublane tile
    # Flat padded-spatial length; must cover the largest tap slice end
    # ((H+2)*(W+2) + 2); rounded up to full lanes.
    L = pl.cdiv(Hp * Wp + 2, 128) * 128

    if images_per_block is None:
        # Fold images into the matmul lane dimension, but keep >= 2 grid
        # steps marked "parallel" so both v7x TensorCores get work.
        images_per_block = max(1, N // 2) if N % 2 == 0 else 1
    nb = images_per_block
    assert N % nb == 0, (N, nb)
    # Per-image column stride inside patch/output; 128-aligned when several
    # images share one matmul so per-image tap/output stores stay aligned.
    col_stride = n_out if nb == 1 else pl.cdiv(n_out, 128) * 128

    # Weights: OIHW -> (Cout, 9*Cs) with K index (dy*3+dx)*Cs + ci and zero
    # columns for the padded channels; cast once to bf16.
    w_f = jnp.transpose(w_oihw, (0, 2, 3, 1))             # (Cout, 3, 3, Cin)
    w_f = jnp.pad(w_f, ((0, 0), (0, 0), (0, 0), (0, Cs - Cin)))
    w_f = w_f.reshape(Cout, 9 * Cs).astype(jnp.bfloat16)

    # Input: one fused XLA pad/cast/reshape producing the zero-padded,
    # channel-padded, bf16, flat image the kernel consumes directly
    # (replaces the v1 in-kernel halo build; review items 1 & 9).
    xp = jnp.pad(x_nchw.astype(jnp.bfloat16),
                 ((0, 0), (0, Cs - Cin), (1, 1), (1, 1)))
    xp = xp.reshape(N, Cs, Hp * Wp)
    xp = jnp.pad(xp, ((0, 0), (0, 0), (0, L - Hp * Wp)))

    kernel = _make_conv3x3_kernel(H, W, Cs, Cout, nb, n_out, col_stride)
    out_flat = pl.pallas_call(
        kernel,
        out_shape=jax.ShapeDtypeStruct((N, Cout, col_stride), out_dtype),
        grid=(N // nb,),
        in_specs=[
            pl.BlockSpec((nb, Cs, L), lambda b: (b, 0, 0)),
            pl.BlockSpec((Cout, 9 * Cs), lambda b: (0, 0)),
        ],
        out_specs=pl.BlockSpec((nb, Cout, col_stride), lambda b: (b, 0, 0)),
        scratch_shapes=[
            pltpu.VMEM((9 * Cs, nb * col_stride), jnp.bfloat16),
        ],
        compiler_params=pltpu.CompilerParams(
            dimension_semantics=("parallel",),
            # Explicit scoped-VMEM budget (v5e's default is only 16 MiB);
            # far above this kernel's footprint, within every generation's
            # physical VMEM (== v7x physical).
            vmem_limit_bytes=64 * 1024 * 1024),
    )(xp, w_f)

    # Drop the 2 junk columns per row from the flat-window trick (and any
    # inter-image alignment padding when nb > 1).
    return out_flat[:, :, :n_out].reshape(N, Cout, H, Wp)[:, :, :, :W]


def pixel_shuffle(x_nchw, r):
    """Matches torch.nn.functional.pixel_shuffle semantics (NCHW)."""
    N, Cr2, H, W = x_nchw.shape
    C = Cr2 // (r * r)
    x = x_nchw.reshape(N, C, r, r, H, W)
    x = jnp.transpose(x, (0, 1, 4, 2, 5, 3))      # (N, C, H, r, W, r)
    return x.reshape(N, C, H * r, W * r)


class UpSample:
    """JAX/Pallas port of the EDSR UpSample block (weights in PyTorch OIHW)."""

    def __init__(self, channels, factor, key):
        self.channels = channels
        self.factor = factor
        cout = int(channels * factor ** 2)
        k1, k2 = jax.random.split(key)
        scale = 0.05
        self.w1 = scale * jax.random.normal(k1, (cout, channels, 3, 3), jnp.float32)
        self.w2 = scale * jax.random.normal(k2, (cout, channels, 3, 3), jnp.float32)

    def __call__(self, x_nchw):
        r = self.factor
        # conv1 intermediate kept in bf16 (review item 5): it is an MXU bf16
        # operand in conv2 anyway; halves its HBM round trip.
        x = conv3x3_same(x_nchw, self.w1, out_dtype=jnp.bfloat16)
        x = pixel_shuffle(x, r)
        x = conv3x3_same(x, self.w2, out_dtype=jnp.float32)
        x = pixel_shuffle(x, r)
        return x


def _reference_forward(x, w1, w2, r):
    """Pure-XLA f32 reference for a loose numerical cross-check."""
    dn = ("NCHW", "OIHW", "NCHW")
    y = jax.lax.conv_general_dilated(x, w1, (1, 1), ((1, 1), (1, 1)),
                                     dimension_numbers=dn)
    y = pixel_shuffle(y, r)
    y = jax.lax.conv_general_dilated(y, w2, (1, 1), ((1, 1), (1, 1)),
                                     dimension_numbers=dn)
    return pixel_shuffle(y, r)


if __name__ == "__main__":
    key = jax.random.PRNGKey(0)
    k_x, k_p = jax.random.split(key)

    batch, channels, H, W = 2, 4, 16, 16
    factor = 2

    x = jax.random.normal(k_x, (batch, channels, H, W), jnp.float32)

    block = UpSample(channels, factor, k_p)
    fwd = jax.jit(block.__call__)
    out = jax.block_until_ready(fwd(x))

    expected_shape = (batch, channels, H * factor ** 2, W * factor ** 2)
    assert out.shape == expected_shape, (out.shape, expected_shape)
    assert out.dtype == jnp.float32

    # Loose cross-check vs XLA f32 conv (kernel uses bf16 MXU operands and a
    # bf16 intermediate, hence the loose tolerance).
    ref = jax.block_until_ready(
        _reference_forward(x, block.w1, block.w2, factor))
    np.testing.assert_allclose(np.asarray(out), np.asarray(ref),
                               rtol=5e-2, atol=2e-2)

    print("KERNEL_OK")
</pallas_src>

<mosaic_0001>
module attributes {stable_mosaic.version = 11 : i64} {
  func.func @kernel(%arg0: i32, %arg1: memref<1x8x384xbf16, #tpu.memory_space<vmem>>, %arg2: memref<16x72xbf16, #tpu.memory_space<vmem>>, %arg3: memref<1x16x288xbf16, #tpu.memory_space<vmem>>, %arg4: memref<72x288xbf16, #tpu.memory_space<vmem>>) attributes {dimension_semantics = [#tpu.dimension_semantics<parallel>], iteration_bounds = array<i64: 2>, scalar_prefetch = 0 : i64, scratch_operands = 1 : i64, tpu.core_type = #tpu.core_type<tc>, window_params = [{transform_indices = @transform_0, window_bounds = array<i64: 1, 8, 384>}, {pipeline_mode = #tpu.pipeline_mode<synchronous>, transform_indices = @transform_1, window_bounds = array<i64: 16, 72>}, {transform_indices = @transform_2, window_bounds = array<i64: 1, 16, 288>}]} {
    %c0 = arith.constant 0 : index
    %c0_0 = arith.constant 0 : index
    %c0_1 = arith.constant 0 : index
    %0 = vector.load %arg1[%c0, %c0_0, %c0_1] : memref<1x8x384xbf16, #tpu.memory_space<vmem>>, vector<1x8x288xbf16>
    %1 = vector.shape_cast %0 : vector<1x8x288xbf16> to vector<8x288xbf16>
    %c0_2 = arith.constant 0 : index
    %c0_3 = arith.constant 0 : index
    %2 = vector.load %arg4[%c0_2, %c0_3] : memref<72x288xbf16, #tpu.memory_space<vmem>>, vector<8x288xbf16>
    tpu.vector_store %arg4[%c0_2, %c0_3], %1 {strides = array<i32>} : memref<72x288xbf16, #tpu.memory_space<vmem>>, vector<8x288xbf16>,
    %c0_4 = arith.constant 0 : index
    %c0_5 = arith.constant 0 : index
    %c1 = arith.constant 1 : index
    %3 = vector.load %arg1[%c0_4, %c0_5, %c1] : memref<1x8x384xbf16, #tpu.memory_space<vmem>>, vector<1x8x288xbf16>
    %4 = vector.shape_cast %3 : vector<1x8x288xbf16> to vector<8x288xbf16>
    %c8 = arith.constant 8 : index
    %c0_6 = arith.constant 0 : index
    %5 = vector.load %arg4[%c8, %c0_6] : memref<72x288xbf16, #tpu.memory_space<vmem>>, vector<8x288xbf16>
    tpu.vector_store %arg4[%c8, %c0_6], %4 {strides = array<i32>} : memref<72x288xbf16, #tpu.memory_space<vmem>>, vector<8x288xbf16>,
    %c0_7 = arith.constant 0 : index
    %c0_8 = arith.constant 0 : index
    %c2 = arith.constant 2 : index
    %6 = vector.load %arg1[%c0_7, %c0_8, %c2] : memref<1x8x384xbf16, #tpu.memory_space<vmem>>, vector<1x8x288xbf16>
    %7 = vector.shape_cast %6 : vector<1x8x288xbf16> to vector<8x288xbf16>
    %c16 = arith.constant 16 : index
    %c0_9 = arith.constant 0 : index
    %8 = vector.load %arg4[%c16, %c0_9] : memref<72x288xbf16, #tpu.memory_space<vmem>>, vector<8x288xbf16>
    tpu.vector_store %arg4[%c16, %c0_9], %7 {strides = array<i32>} : memref<72x288xbf16, #tpu.memory_space<vmem>>, vector<8x288xbf16>,
    %c0_10 = arith.constant 0 : index
    %c0_11 = arith.constant 0 : index
    %c18 = arith.constant 18 : index
    %9 = vector.load %arg1[%c0_10, %c0_11, %c18] : memref<1x8x384xbf16, #tpu.memory_space<vmem>>, vector<1x8x288xbf16>
    %10 = vector.shape_cast %9 : vector<1x8x288xbf16> to vector<8x288xbf16>
    %c24 = arith.constant 24 : index
    %c0_12 = arith.constant 0 : index
    %11 = vector.load %arg4[%c24, %c0_12] : memref<72x288xbf16, #tpu.memory_space<vmem>>, vector<8x288xbf16>
    tpu.vector_store %arg4[%c24, %c0_12], %10 {strides = array<i32>} : memref<72x288xbf16, #tpu.memory_space<vmem>>, vector<8x288xbf16>,
    %c0_13 = arith.constant 0 : index
    %c0_14 = arith.constant 0 : index
    %c19 = arith.constant 19 : index
    %12 = vector.load %arg1[%c0_13, %c0_14, %c19] : memref<1x8x384xbf16, #tpu.memory_space<vmem>>, vector<1x8x288xbf16>
    %13 = vector.shape_cast %12 : vector<1x8x288xbf16> to vector<8x288xbf16>
    %c32 = arith.constant 32 : index
    %c0_15 = arith.constant 0 : index
    %14 = vector.load %arg4[%c32, %c0_15] : memref<72x288xbf16, #tpu.memory_space<vmem>>, vector<8x288xbf16>
    tpu.vector_store %arg4[%c32, %c0_15], %13 {strides = array<i32>} : memref<72x288xbf16, #tpu.memory_space<vmem>>, vector<8x288xbf16>,
    %c0_16 = arith.constant 0 : index
    %c0_17 = arith.constant 0 : index
    %c20 = arith.constant 20 : index
    %15 = vector.load %arg1[%c0_16, %c0_17, %c20] : memref<1x8x384xbf16, #tpu.memory_space<vmem>>, vector<1x8x288xbf16>
    %16 = vector.shape_cast %15 : vector<1x8x288xbf16> to vector<8x288xbf16>
    %c40 = arith.constant 40 : index
    %c0_18 = arith.constant 0 : index
    %17 = vector.load %arg4[%c40, %c0_18] : memref<72x288xbf16, #tpu.memory_space<vmem>>, vector<8x288xbf16>
    tpu.vector_store %arg4[%c40, %c0_18], %16 {strides = array<i32>} : memref<72x288xbf16, #tpu.memory_space<vmem>>, vector<8x288xbf16>,
    %c0_19 = arith.constant 0 : index
    %c0_20 = arith.constant 0 : index
    %c36 = arith.constant 36 : index
    %18 = vector.load %arg1[%c0_19, %c0_20, %c36] : memref<1x8x384xbf16, #tpu.memory_space<vmem>>, vector<1x8x288xbf16>
    %19 = vector.shape_cast %18 : vector<1x8x288xbf16> to vector<8x288xbf16>
    %c48 = arith.constant 48 : index
    %c0_21 = arith.constant 0 : index
    %20 = vector.load %arg4[%c48, %c0_21] : memref<72x288xbf16, #tpu.memory_space<vmem>>, vector<8x288xbf16>
    tpu.vector_store %arg4[%c48, %c0_21], %19 {strides = array<i32>} : memref<72x288xbf16, #tpu.memory_space<vmem>>, vector<8x288xbf16>,
    %c0_22 = arith.constant 0 : index
    %c0_23 = arith.constant 0 : index
    %c37 = arith.constant 37 : index
    %21 = vector.load %arg1[%c0_22, %c0_23, %c37] : memref<1x8x384xbf16, #tpu.memory_space<vmem>>, vector<1x8x288xbf16>
    %22 = vector.shape_cast %21 : vector<1x8x288xbf16> to vector<8x288xbf16>
    %c56 = arith.constant 56 : index
    %c0_24 = arith.constant 0 : index
    %23 = vector.load %arg4[%c56, %c0_24] : memref<72x288xbf16, #tpu.memory_space<vmem>>, vector<8x288xbf16>
    tpu.vector_store %arg4[%c56, %c0_24], %22 {strides = array<i32>} : memref<72x288xbf16, #tpu.memory_space<vmem>>, vector<8x288xbf16>,
    %c0_25 = arith.constant 0 : index
    %c0_26 = arith.constant 0 : index
    %c38 = arith.constant 38 : index
    %24 = vector.load %arg1[%c0_25, %c0_26, %c38] : memref<1x8x384xbf16, #tpu.memory_space<vmem>>, vector<1x8x288xbf16>
    %25 = vector.shape_cast %24 : vector<1x8x288xbf16> to vector<8x288xbf16>
    %c64 = arith.constant 64 : index
    %c0_27 = arith.constant 0 : index
    %26 = vector.load %arg4[%c64, %c0_27] : memref<72x288xbf16, #tpu.memory_space<vmem>>, vector<8x288xbf16>
    tpu.vector_store %arg4[%c64, %c0_27], %25 {strides = array<i32>} : memref<72x288xbf16, #tpu.memory_space<vmem>>, vector<8x288xbf16>,
    %c0_28 = arith.constant 0 : index
    %c0_29 = arith.constant 0 : index
    %27 = vector.load %arg2[%c0_28, %c0_29] : memref<16x72xbf16, #tpu.memory_space<vmem>>, vector<16x72xbf16>
    %c0_30 = arith.constant 0 : index
    %c0_31 = arith.constant 0 : index
    %28 = vector.load %arg4[%c0_30, %c0_31] : memref<72x288xbf16, #tpu.memory_space<vmem>>, vector<72x288xbf16>
    %cst = arith.constant dense<0.000000e+00> : vector<16x288xf32>
    %29 = tpu.matmul %27, %28, %cst {dimension_numbers = #tpu.dot_dimension_numbers<[1], [0], [0], [1], [0, 0, 1, 1], [], []>} : vector<16x72xbf16>, vector<72x288xbf16>, vector<16x288xf32> -> vector<16x288xf32>
    %30 = arith.truncf %29 : vector<16x288xf32> to vector<16x288xbf16>
    %c0_32 = arith.constant 0 : index
    %c0_33 = arith.constant 0 : index
    %c0_34 = arith.constant 0 : index
    %31 = vector.load %arg3[%c0_32, %c0_33, %c0_34] : memref<1x16x288xbf16, #tpu.memory_space<vmem>>, vector<1x16x288xbf16>
    %32 = vector.shape_cast %31 : vector<1x16x288xbf16> to vector<16x288xbf16>
    %33 = vector.shape_cast %30 : vector<16x288xbf16> to vector<1x16x288xbf16>
    tpu.vector_store %arg3[%c0_32, %c0_33, %c0_34], %33 {strides = array<i32>} : memref<1x16x288xbf16, #tpu.memory_space<vmem>>, vector<1x16x288xbf16>,
    return
  }
  func.func @transform_0(%arg0: i32) -> (i32, i32, i32) {
    %c0_i32 = arith.constant 0 : i32
    %c0_i32_0 = arith.constant 0 : i32
    %c0_i32_1 = arith.constant 0 : i32
    return %arg0, %c0_i32, %c0_i32_0 : i32, i32, i32
  }
  func.func @transform_1(%arg0: i32) -> (i32, i32) {
    %c0_i32 = arith.constant 0 : i32
    %c0_i32_0 = arith.constant 0 : i32
    %c0_i32_1 = arith.constant 0 : i32
    return %c0_i32, %c0_i32_0 : i32, i32
  }
  func.func @transform_2(%arg0: i32) -> (i32, i32, i32) {
    %c0_i32 = arith.constant 0 : i32
    %c0_i32_0 = arith.constant 0 : i32
    %c0_i32_1 = arith.constant 0 : i32
    return %arg0, %c0_i32, %c0_i32_0 : i32, i32, i32
  }
}

module attributes {stable_mosaic.version = 11 : i64} {
  func.func @kernel(%arg0: i32, %arg1: memref<1x8x1280xbf16, #tpu.memory_space<vmem>>, %arg2: memref<16x72xbf16, #tpu.memory_space<vmem>>, %arg3: memref<1x16x1088xf32, #tpu.memory_space<vmem>>, %arg4: memref<72x1088xbf16, #tpu.memory_space<vmem>>) attributes {dimension_semantics = [#tpu.dimension_semantics<parallel>], iteration_bounds = array<i64: 2>, scalar_prefetch = 0 : i64, scratch_operands = 1 : i64, tpu.core_type = #tpu.core_type<tc>, window_params = [{transform_indices = @transform_0, window_bounds = array<i64: 1, 8, 1280>}, {pipeline_mode = #tpu.pipeline_mode<synchronous>, transform_indices = @transform_1, window_bounds = array<i64: 16, 72>}, {transform_indices = @transform_2, window_bounds = array<i64: 1, 16, 1088>}]} {
    %c0 = arith.constant 0 : index
    %c0_0 = arith.constant 0 : index
    %c0_1 = arith.constant 0 : index
    %0 = vector.load %arg1[%c0, %c0_0, %c0_1] : memref<1x8x1280xbf16, #tpu.memory_space<vmem>>, vector<1x8x1088xbf16>
    %1 = vector.shape_cast %0 : vector<1x8x1088xbf16> to vector<8x1088xbf16>
    %c0_2 = arith.constant 0 : index
    %c0_3 = arith.constant 0 : index
    %2 = vector.load %arg4[%c0_2, %c0_3] : memref<72x1088xbf16, #tpu.memory_space<vmem>>, vector<8x1088xbf16>
    tpu.vector_store %arg4[%c0_2, %c0_3], %1 {strides = array<i32>} : memref<72x1088xbf16, #tpu.memory_space<vmem>>, vector<8x1088xbf16>,
    %c0_4 = arith.constant 0 : index
    %c0_5 = arith.constant 0 : index
    %c1 = arith.constant 1 : index
    %3 = vector.load %arg1[%c0_4, %c0_5, %c1] : memref<1x8x1280xbf16, #tpu.memory_space<vmem>>, vector<1x8x1088xbf16>
    %4 = vector.shape_cast %3 : vector<1x8x1088xbf16> to vector<8x1088xbf16>
    %c8 = arith.constant 8 : index
    %c0_6 = arith.constant 0 : index
    %5 = vector.load %arg4[%c8, %c0_6] : memref<72x1088xbf16, #tpu.memory_space<vmem>>, vector<8x1088xbf16>
    tpu.vector_store %arg4[%c8, %c0_6], %4 {strides = array<i32>} : memref<72x1088xbf16, #tpu.memory_space<vmem>>, vector<8x1088xbf16>,
    %c0_7 = arith.constant 0 : index
    %c0_8 = arith.constant 0 : index
    %c2 = arith.constant 2 : index
    %6 = vector.load %arg1[%c0_7, %c0_8, %c2] : memref<1x8x1280xbf16, #tpu.memory_space<vmem>>, vector<1x8x1088xbf16>
    %7 = vector.shape_cast %6 : vector<1x8x1088xbf16> to vector<8x1088xbf16>
    %c16 = arith.constant 16 : index
    %c0_9 = arith.constant 0 : index
    %8 = vector.load %arg4[%c16, %c0_9] : memref<72x1088xbf16, #tpu.memory_space<vmem>>, vector<8x1088xbf16>
    tpu.vector_store %arg4[%c16, %c0_9], %7 {strides = array<i32>} : memref<72x1088xbf16, #tpu.memory_space<vmem>>, vector<8x1088xbf16>,
    %c0_10 = arith.constant 0 : index
    %c0_11 = arith.constant 0 : index
    %c34 = arith.constant 34 : index
    %9 = vector.load %arg1[%c0_10, %c0_11, %c34] : memref<1x8x1280xbf16, #tpu.memory_space<vmem>>, vector<1x8x1088xbf16>
    %10 = vector.shape_cast %9 : vector<1x8x1088xbf16> to vector<8x1088xbf16>
    %c24 = arith.constant 24 : index
    %c0_12 = arith.constant 0 : index
    %11 = vector.load %arg4[%c24, %c0_12] : memref<72x1088xbf16, #tpu.memory_space<vmem>>, vector<8x1088xbf16>
    tpu.vector_store %arg4[%c24, %c0_12], %10 {strides = array<i32>} : memref<72x1088xbf16, #tpu.memory_space<vmem>>, vector<8x1088xbf16>,
    %c0_13 = arith.constant 0 : index
    %c0_14 = arith.constant 0 : index
    %c35 = arith.constant 35 : index
    %12 = vector.load %arg1[%c0_13, %c0_14, %c35] : memref<1x8x1280xbf16, #tpu.memory_space<vmem>>, vector<1x8x1088xbf16>
    %13 = vector.shape_cast %12 : vector<1x8x1088xbf16> to vector<8x1088xbf16>
    %c32 = arith.constant 32 : index
    %c0_15 = arith.constant 0 : index
    %14 = vector.load %arg4[%c32, %c0_15] : memref<72x1088xbf16, #tpu.memory_space<vmem>>, vector<8x1088xbf16>
    tpu.vector_store %arg4[%c32, %c0_15], %13 {strides = array<i32>} : memref<72x1088xbf16, #tpu.memory_space<vmem>>, vector<8x1088xbf16>,
    %c0_16 = arith.constant 0 : index
    %c0_17 = arith.constant 0 : index
    %c36 = arith.constant 36 : index
    %15 = vector.load %arg1[%c0_16, %c0_17, %c36] : memref<1x8x1280xbf16, #tpu.memory_space<vmem>>, vector<1x8x1088xbf16>
    %16 = vector.shape_cast %15 : vector<1x8x1088xbf16> to vector<8x1088xbf16>
    %c40 = arith.constant 40 : index
    %c0_18 = arith.constant 0 : index
    %17 = vector.load %arg4[%c40, %c0_18] : memref<72x1088xbf16, #tpu.memory_space<vmem>>, vector<8x1088xbf16>
    tpu.vector_store %arg4[%c40, %c0_18], %16 {strides = array<i32>} : memref<72x1088xbf16, #tpu.memory_space<vmem>>, vector<8x1088xbf16>,
    %c0_19 = arith.constant 0 : index
    %c0_20 = arith.constant 0 : index
    %c68 = arith.constant 68 : index
    %18 = vector.load %arg1[%c0_19, %c0_20, %c68] : memref<1x8x1280xbf16, #tpu.memory_space<vmem>>, vector<1x8x1088xbf16>
    %19 = vector.shape_cast %18 : vector<1x8x1088xbf16> to vector<8x1088xbf16>
    %c48 = arith.constant 48 : index
    %c0_21 = arith.constant 0 : index
    %20 = vector.load %arg4[%c48, %c0_21] : memref<72x1088xbf16, #tpu.memory_space<vmem>>, vector<8x1088xbf16>
    tpu.vector_store %arg4[%c48, %c0_21], %19 {strides = array<i32>} : memref<72x1088xbf16, #tpu.memory_space<vmem>>, vector<8x1088xbf16>,
    %c0_22 = arith.constant 0 : index
    %c0_23 = arith.constant 0 : index
    %c69 = arith.constant 69 : index
    %21 = vector.load %arg1[%c0_22, %c0_23, %c69] : memref<1x8x1280xbf16, #tpu.memory_space<vmem>>, vector<1x8x1088xbf16>
    %22 = vector.shape_cast %21 : vector<1x8x1088xbf16> to vector<8x1088xbf16>
    %c56 = arith.constant 56 : index
    %c0_24 = arith.constant 0 : index
    %23 = vector.load %arg4[%c56, %c0_24] : memref<72x1088xbf16, #tpu.memory_space<vmem>>, vector<8x1088xbf16>
    tpu.vector_store %arg4[%c56, %c0_24], %22 {strides = array<i32>} : memref<72x1088xbf16, #tpu.memory_space<vmem>>, vector<8x1088xbf16>,
    %c0_25 = arith.constant 0 : index
    %c0_26 = arith.constant 0 : index
    %c70 = arith.constant 70 : index
    %24 = vector.load %arg1[%c0_25, %c0_26, %c70] : memref<1x8x1280xbf16, #tpu.memory_space<vmem>>, vector<1x8x1088xbf16>
    %25 = vector.shape_cast %24 : vector<1x8x1088xbf16> to vector<8x1088xbf16>
    %c64 = arith.constant 64 : index
    %c0_27 = arith.constant 0 : index
    %26 = vector.load %arg4[%c64, %c0_27] : memref<72x1088xbf16, #tpu.memory_space<vmem>>, vector<8x1088xbf16>
    tpu.vector_store %arg4[%c64, %c0_27], %25 {strides = array<i32>} : memref<72x1088xbf16, #tpu.memory_space<vmem>>, vector<8x1088xbf16>,
    %c0_28 = arith.constant 0 : index
    %c0_29 = arith.constant 0 : index
    %27 = vector.load %arg2[%c0_28, %c0_29] : memref<16x72xbf16, #tpu.memory_space<vmem>>, vector<16x72xbf16>
    %c0_30 = arith.constant 0 : index
    %c0_31 = arith.constant 0 : index
    %28 = vector.load %arg4[%c0_30, %c0_31] : memref<72x1088xbf16, #tpu.memory_space<vmem>>, vector<72x1088xbf16>
    %cst = arith.constant dense<0.000000e+00> : vector<16x1088xf32>
    %29 = tpu.matmul %27, %28, %cst {dimension_numbers = #tpu.dot_dimension_numbers<[1], [0], [0], [1], [0, 0, 1, 1], [], []>} : vector<16x72xbf16>, vector<72x1088xbf16>, vector<16x1088xf32> -> vector<16x1088xf32>
    %c0_32 = arith.constant 0 : index
    %c0_33 = arith.constant 0 : index
    %c0_34 = arith.constant 0 : index
    %30 = vector.load %arg3[%c0_32, %c0_33, %c0_34] : memref<1x16x1088xf32, #tpu.memory_space<vmem>>, vector<1x16x1088xf32>
    %31 = vector.shape_cast %30 : vector<1x16x1088xf32> to vector<16x1088xf32>
    %32 = vector.shape_cast %29 : vector<16x1088xf32> to vector<1x16x1088xf32>
    tpu.vector_store %arg3[%c0_32, %c0_33, %c0_34], %32 {strides = array<i32>} : memref<1x16x1088xf32, #tpu.memory_space<vmem>>, vector<1x16x1088xf32>,
    return
  }
  func.func @transform_0(%arg0: i32) -> (i32, i32, i32) {
    %c0_i32 = arith.constant 0 : i32
    %c0_i32_0 = arith.constant 0 : i32
    %c0_i32_1 = arith.constant 0 : i32
    return %arg0, %c0_i32, %c0_i32_0 : i32, i32, i32
  }
  func.func @transform_1(%arg0: i32) -> (i32, i32) {
    %c0_i32 = arith.constant 0 : i32
    %c0_i32_0 = arith.constant 0 : i32
    %c0_i32_1 = arith.constant 0 : i32
    return %c0_i32, %c0_i32_0 : i32, i32
  }
  func.func @transform_2(%arg0: i32) -> (i32, i32, i32) {
    %c0_i32 = arith.constant 0 : i32
    %c0_i32_0 = arith.constant 0 : i32
    %c0_i32_1 = arith.constant 0 : i32
    return %arg0, %c0_i32, %c0_i32_0 : i32, i32, i32
  }
}

</mosaic_0001>

<bundles_post_ra>
// kernel: a_call__.2
= control target key start
LH: loop header
LB: loop body
LE: loop exit
PB: predicated region body
PF: predicated region fallthrough
CT: control target
= control target key end

     0   :  { %7 = vsyncpa [#allocation4], 0  ;;  %s710_s9 = smov 0   ;;  %s780_s0 = inlined_call_operand.vmem [shape: bf16[2,8,384], index: 0, kind: input, shape index: {}]   ;;  %s781_s1 = inlined_call_operand.hbm [shape: bf16[16,72], index: 1, kind: input, shape index: {}]   ;;  %s782_s2 = inlined_call_operand.vmem [shape: bf16[2,16,288], index: 2, kind: output, shape index: {}]  }
   0x1 LB: > { %s102_s12 = sshll.u32 %s781_s1, 4  ;;  %s532_s13 = sadd.s32 4294967295, %s682_s9   ;;  %s682_s9 = sphi %s710_s9, %s13_s9   ;;  %s103_s12 = int_to_ptr.hbm [resolvable:$true] %s102_s12 }
   0x2   : > { %p534_p0 = scmp.ge.s32.totalorder %s682_s9, 1  ;;  %p91_p1 = scmp.lt.s32.totalorder %s682_s9, 3 }
   0x3   : > { %p621_p2 = scmp.eq.s32.totalorder %s532_s13, 0  ;;  %s684_s14 = smov [#allocation3]  }
   0x4   : > { %p92_p3 = pnand %p534_p0, %p91_p1  ;;  %s104_s15 = sshll.u32 %s684_s14, 4  ;;  %s105_s15 = int_to_ptr.vmem [resolvable:$true] %s104_s15 }
   0x5   : > { %s685_s16 = smov 64   ;;  %s686_s17 = smov 4  }
   0x6   : > { %p617_p4 = pneg %p92_p3  ;;  %128 = sbr.rel (%p92_p3) target bundleno = 328 (0x148), region = 28 }
   0x8   : > { %p618_p5 = pnand %p621_p2, %p617_p4 }
   0xa   : > { %620 = dma.hbm_to_vmem [thread:$0]  (!%p618_p5), %s103_s12, 128, %s105_s15, [#allocation4], %s685_s16, %s685_s16, %s686_s17  }
   0xb   : > { %677 = dma.done.wait (%p621_p2), [#allocation4], 128  }
   0xc   : > { %679 = vsyncadd (%p621_p2), [#allocation4], 4294967168  ;;  %p151_p6 = scmp.lt.s32.totalorder %s532_s13, 1  ;;  %s687_s22 = smov 90   ;;  %vm165_vm0 = vcmask 257024   ;;  %vm177_vm1 = vcmask 1043456  }
   0xd   : > { %s688_s23 = smov 92   ;;  %s689_s24 = smov 91   ;;  %vm264_vm2 = vcmask 752640   ;;  %vm298_vm3 = vcmask 736256   ;;  %vm281_vm4 = vcmask 744448   ;;  %vm230_vm5 = vcmask 891904  }
   0xe   : > { %s784_s13 = smov (!%p151_p6, %s532_s13), 1  ;;  %s690_s25 = smov 108   ;;  %vm247_vm6 = vcmask 883712   ;;  %vm213_vm7 = vcmask 900096   ;;  %vm196_vm8 = vcmask 1031168   ;;  %vm401_vm9 = vcmask 588800  }
   0xf   : > { %s611_s18 = smul.u32 12, %s784_s13  ;;  %s691_s26 = smov 109   ;;  %vm179_vm10 = vcmask 1039360  }
  0x10   : > { %s692_s27 = smov 126   ;;  %s693_s28 = smov 110  }
  0x11   : > { %s727_s21 = scalar_lea.vmem %s780_s0, %s611_s18  ;;  %s694_s29 = smov 127  }
  0x12   : > { %v288_v0 = vld [vmem:[%s727_s21 + $0x8] sm:$0xf]  ;;  %v287_v2 = vld [vmem:[%s727_s21] sm:$0xff]  ;;  %s612_s30 = smul.u32 24, %s784_s13 }
  0x13   : > { %v254_v1 = vld [vmem:[%s727_s21 + $0x8] sm:$0xf]  ;;  %293 = vrot.lane.b32.xlu0 %v288_v0, %s687_s22  ;;  %164 = vst [vmem:[#allocation2] sm:$0xff] %v287_v2  ;;  %257 = vrot.lane.b32.xlu2 %v287_v2, %s688_s23 }
  0x14   : > { %259 = vrot.lane.b32.xlu1 %v254_v1, %s688_s23  ;;  %v271_v3 = vld [vmem:[%s727_s21 + $0x8] sm:$0xf]  ;;  %s160_s5 = scalar_lea.vmem %s782_s2, %s612_s30 }
  0x15   : > { %v237_v4 = vld [vmem:[%s727_s21 + $0x8] sm:$0xf] }
  0x16   : > { %v220_v5 = vld [vmem:[%s727_s21 + $0x8] sm:$0xf] }
  0x17   : > { %v186_v6 = vld [vmem:[%s727_s21 + $0x8] sm:$0xf] }
  0x18   : > { %v203_v7 = vld [vmem:[%s727_s21 + $0x8] sm:$0xf] }
  0x19   : > { %v168_v8 = vld [vmem:[%s727_s21 + $0x8] sm:$0xf] }
  0x1a   : > { %v163_v13 = vld [vmem:[%s727_s21 + $0x8] sm:$0xf] }
  0x1b   : > { %291 = vrot.lane.b32.xlu0 %v287_v2, %s687_s22  ;;  %274 = vrot.lane.b32.xlu2 %v287_v2, %s689_s24  ;;  %166 = vst.msk [vmem:[#allocation2 + $0x8] sm:$0xf] %vm165_vm0, %v163_v13 }
  0x1c   : > { %276 = vrot.lane.b32.xlu1 %v271_v3, %s689_s24 }
  0x23   : > { %225 = vrot.lane.b32.xlu0 %v220_v5, %s691_s26  ;;  %223 = vrot.lane.b32.xlu2 %v287_v2, %s691_s26 }
  0x24   : > { %242 = vrot.lane.b32.xlu1 %v237_v4, %s690_s25 }
  0x2b   : > { %240 = vrot.lane.b32.xlu0 %v287_v2, %s690_s25  ;;  %208 = vrot.lane.b32.xlu2 %v203_v7, %s693_s28 }
  0x2c   : > { %191 = vrot.lane.b32.xlu1 %v186_v6, %s692_s27  ;;  %v555_v6 = vld [vmem:[#allocation2 + $0x8] sm:$0xf] }
  0x33   : > { %189 = vrot.lane.b32.xlu0 %v287_v2, %s692_s27  ;;  %173 = vrot.lane.b32.xlu2 %v168_v8, %s694_s29 }
  0x34   : > { %206 = vrot.lane.b32.xlu1 %v287_v2, %s693_s28 }
  0x3b   : > { %171 = vrot.lane.b32.xlu0 %v287_v2, %s694_s29 }
  0x6d   : > { %v258_v9 = vpop.permute.xlu2 %257 }
  0x6e   : > { %v261_v12 = vrot.slane %v258_v9, 4 }
  0x75   : > { %v275_v10 = vpop.permute.xlu2 %274 }
  0x76   : > { %v278_v20 = vrot.slane %v275_v10, 4 }
  0x7d   : > { %v224_v11 = vpop.permute.xlu2 %223 }
  0x7e   : > { %v227_v37 = vrot.slane %v224_v11, 4 }
  0x85   : > { %v294_v14 = vpop.permute.xlu0 %293  ;;  %v741_v17 = vpop.permute.xlu2 %208 }
  0x86   : > { %v260_v15 = vpop.permute.xlu1 %259  ;;  %303 = vst.msk [vmem:[#allocation2 + $0x68] sm:$0xf] %vm165_vm0, %v294_v14  ;;  %v296_v24 = vrot.slane %v294_v14, 4  ;;  %v211_v2 = vrot.slane %v741_v17, 4 }
  0x87   : > { %v262_v16 = vrot.slane %v260_v15, 4  ;;  %269 = vst.msk [vmem:[#allocation2 + $0x50] sm:$0xf] %vm165_vm0, %v260_v15 }
  0x88   : > { %218 = vst.msk [vmem:[#allocation2 + $0x2c] sm:$0xf] %vm165_vm0, %v741_v17 }
  0x89   : > { %v263_v18 = vsel %vm177_vm1, %v261_v12, %v262_v16 }
  0x8a   : > { %v265_v19 = vsel %vm264_vm2, %v258_v9, %v263_v18 }
  0x8b   : > { %268 = vst [vmem:[#allocation2 + $0x48] sm:$0xff] %v265_v19 }
  0x8d   : > { %v292_v21 = vpop.permute.xlu0 %291  ;;  %v323_v23 = vld [vmem:[#allocation2 + $0x68] sm:$0xf]  ;;  %v748_v28 = vpop.permute.xlu2 %173 }
  0x8e   : > { %v277_v22 = vpop.permute.xlu1 %276  ;;  %v295_v25 = vrot.slane %v292_v21, 4  ;;  %v373_v27 = vunpack.c.l.b16 %v323_v23  ;;  %184 = vst.msk [vmem:[#allocation2 + $0x14] sm:$0xf] %vm165_vm0, %v748_v28  ;;  %v591_v42 = vld [vmem:[#allocation2 + $0x50] sm:$0xf] }
  0x8f   : > { %v279_v26 = vrot.slane %v277_v22, 4  ;;  %286 = vst.msk [vmem:[#allocation2 + $0x5c] sm:$0xf] %vm165_vm0, %v277_v22  ;;  %v604_v1 = vld [vmem:[#allocation2 + $0x28] sm:$0xf0] }
  0x90   : > { %v297_v29 = vsel %vm177_vm1, %v295_v25, %v296_v24  ;;  %v388_v31 = vpack.c.b16 %v373_v27, %v373_v27  ;;  %v598_v23 = vld [vmem:[#allocation3] sm:$0xff]  ;;  %v176_v25 = vrot.slane %v748_v28, 4 }
  0x91   : > { %v280_v30 = vsel %vm177_vm1, %v278_v20, %v279_v26  ;;  %v299_v32 = vsel %vm298_vm3, %v292_v21, %v297_v29 }
  0x92   : > { %v282_v33 = vsel %vm281_vm4, %v275_v10, %v280_v30  ;;  %v413_v34 = vsel %vm177_vm1, %v388_v31, 0  ;;  %v371_v35 = vunpack.c.l.b16 %v299_v32  ;;  %v372_v36 = vunpack.c.h.b16 %v299_v32  ;;  %v583_v50 = vld [vmem:[#allocation2 + $0x48] sm:$0xf]  ;;  %v608_v51 = vld [vmem:[#allocation2 + $0x4c] sm:$0xf] }
  0x93   : > { %285 = vst [vmem:[#allocation2 + $0x54] sm:$0xff] %v282_v33  ;;  %446 = vmatpush.bf16.msra.mxu2 %v413_v34 }
  0x94   : > { %v386_v38 = vpack.c.b16 %v371_v35, %v371_v35  ;;  %v387_v39 = vpack.c.b16 %v372_v36, %v372_v36  ;;  %v547_v36 = vld [vmem:[#allocation2] sm:$0xf] }
  0x95   : > { %v226_v41 = vpop.permute.xlu0 %225 }
  0x96   : > { %v243_v40 = vpop.permute.xlu1 %242  ;;  %v610_v43 = vld [vmem:[#allocation2 + $0x58] sm:$0xf0]  ;;  %v228_v44 = vrot.slane %v226_v41, 4  ;;  %v407_v46 = vsel %vm177_vm1, %v386_v38, 0  ;;  %235 = vst.msk [vmem:[#allocation2 + $0x38] sm:$0xf] %vm165_vm0, %v226_v41 }
  0x97   : > { %252 = vst.msk [vmem:[#allocation2 + $0x44] sm:$0xf] %vm165_vm0, %v243_v40  ;;  %v592_v45 = vor.u32 %v610_v43, %v591_v42  ;;  %418 = vmatpush.bf16.msra.mxu0 %v407_v46  ;;  %v410_v47 = vsel %vm177_vm1, %v387_v39, 0  ;;  %v245_v59 = vrot.slane %v243_v40, 4 }
  0x98   : > { %v229_v48 = vsel %vm177_vm1, %v227_v37, %v228_v44  ;;  %432 = vmatpush.bf16.msra.mxu1 %v410_v47  ;;  %v599_v37 = vld [vmem:[#allocation2 + $0x4] sm:$0xf] }
  0x99   : > { %447 = vmatpush.bf16.msra.mxu2 %v592_v45  ;;  %v231_v49 = vsel %vm230_vm5, %v224_v11, %v229_v48  ;;  %v601_v11 = vld [vmem:[#allocation2 + $0x10] sm:$0xf0] }
  0x9a   : > { %234 = vst [vmem:[#allocation2 + $0x30] sm:$0xff] %v231_v49  ;;  %v609_v52 = vld [vmem:[#allocation2 + $0x50] sm:$0xf0]  ;;  %v585_v53 = vld [vmem:[#allocation2 + $0x54] sm:$0xf0]  ;;  %v556_v20 = vor.u32 %v601_v11, %v555_v6 }
  0x9b   : > { %v584_v54 = vor.u32 %v609_v52, %v583_v50  ;;  %v588_v55 = vor.u32 %v608_v51, %v585_v53 }
  0x9d   : > { %v241_v56 = vpop.permute.xlu0 %240  ;;  %419 = vmatpush.bf16.msra.mxu0 %v584_v54  ;;  %433 = vmatpush.bf16.msra.mxu1 %v588_v55  ;;  %v579_v61 = vld [vmem:[#allocation2 + $0x38] sm:$0xf] }
  0x9e   : > { %v192_v57 = vpop.permute.xlu1 %191  ;;  %v607_v58 = vld [vmem:[#allocation2 + $0x40] sm:$0xf0]  ;;  %v244_v60 = vrot.slane %v241_v56, 4 }
  0x9f   : > { %201 = vst.msk [vmem:[#allocation2 + $0x20] sm:$0xf] %vm165_vm0, %v192_v57  ;;  %v580_v62 = vor.u32 %v607_v58, %v579_v61  ;;  %v194_v7 = vrot.slane %v192_v57, 4 }
  0xa0   : > { %v246_v63 = vsel %vm177_vm1, %v244_v60, %v245_v59 }
  0xa1   : > { %v248_v0 = vsel %vm247_vm6, %v241_v56, %v246_v63  ;;  %448 = vmatpush.bf16.msra.mxu2 %v580_v62  ;;  %v571_v14 = vld [vmem:[#allocation2 + $0x30] sm:$0xf]  ;;  %v605_v18 = vld [vmem:[#allocation2 + $0x34] sm:$0xf] }
  0xa2   : > { %251 = vst [vmem:[#allocation2 + $0x3c] sm:$0xff] %v248_v0 }
  0xa5   : > { %v190_v4 = vpop.permute.xlu0 %189 }
  0xa6   : > { %v207_v3 = vpop.permute.xlu1 %206  ;;  %v567_v5 = vld [vmem:[#allocation2 + $0x20] sm:$0xf]  ;;  %v193_v9 = vrot.slane %v190_v4, 4 }
  0xa7   : > { %v210_v8 = vrot.slane %v207_v3, 4  ;;  %v568_v10 = vor.u32 %v604_v1, %v567_v5 }
  0xa8   : > { %v195_v13 = vsel %vm177_vm1, %v193_v9, %v194_v7 }
  0xa9   : > { %v212_v12 = vsel %vm177_vm1, %v210_v8, %v211_v2  ;;  %449 = vmatpush.bf16.msra.mxu2 %v568_v10  ;;  %v197_v16 = vsel %vm196_vm8, %v190_v4, %v195_v13  ;;  %v606_v17 = vld [vmem:[#allocation2 + $0x38] sm:$0xf0]  ;;  %v573_v19 = vld [vmem:[#allocation2 + $0x3c] sm:$0xf0] }
  0xaa   : > { %v214_v15 = vsel %vm213_vm7, %v207_v3, %v212_v12  ;;  %v572_v21 = vor.u32 %v606_v17, %v571_v14  ;;  %v576_v22 = vor.u32 %v605_v18, %v573_v19  ;;  %200 = vst [vmem:[#allocation2 + $0x18] sm:$0xff] %v197_v16 }
  0xab   : > { %217 = vst [vmem:[#allocation2 + $0x24] sm:$0xff] %v214_v15 }
  0xac   : > { %420 = vmatpush.bf16.msra.mxu0 %v572_v21  ;;  %434 = vmatpush.bf16.msra.mxu1 %v576_v22 }
  0xad   : > { %v172_v24 = vpop.permute.xlu0 %171  ;;  %450 = vmatpush.bf16.msra.mxu2 %v556_v20 }
  0xae   : > { %v175_v26 = vrot.slane %v172_v24, 4 }
  0xb0   : > { %v178_v27 = vsel %vm177_vm1, %v175_v26, %v176_v25  ;;  %595 = vmatmul.msk.bf16.vlgmr.msra.gmra.mxu2 %vm401_vm9, %v598_v23 }
  0xb1   : > { %v180_v29 = vsel %vm179_vm10, %v172_v24, %v178_v27  ;;  %v559_v32 = vld [vmem:[#allocation2 + $0x18] sm:$0xf]  ;;  %v602_v33 = vld [vmem:[#allocation2 + $0x1c] sm:$0xf] }
  0xb2   : > { %v603_v30 = vld [vmem:[#allocation2 + $0x20] sm:$0xf0]  ;;  %v561_v31 = vld [vmem:[#allocation2 + $0x24] sm:$0xf0]  ;;  %183 = vst [vmem:[#allocation2 + $0xc] sm:$0xff] %v180_v29 }
  0xb3   : > { %v560_v34 = vor.u32 %v603_v30, %v559_v32  ;;  %v564_v35 = vor.u32 %v602_v33, %v561_v31 }
  0xb5   : > { %421 = vmatpush.bf16.msra.mxu0 %v560_v34  ;;  %435 = vmatpush.bf16.msra.mxu1 %v564_v35 }
  0xb9   : > { %v600_v28 = vld [vmem:[#allocation2 + $0x8] sm:$0xf0]  ;;  %v549_v38 = vld [vmem:[#allocation2 + $0xc] sm:$0xf0] }
  0xba   : > { %v548_v39 = vor.u32 %v600_v28, %v547_v36  ;;  %v552_v40 = vor.u32 %v599_v37, %v549_v38 }
  0xbc   : > { %422 = vmatpush.bf16.msra.mxu0 %v548_v39  ;;  %436 = vmatpush.bf16.msra.mxu1 %v552_v40 }
  0xbf   : > { %593 = vmatmul.msk.bf16.vlgmr.msra.gmra.mxu0 %vm401_vm9, %v598_v23  ;;  %594 = vmatmul.msk.bf16.vlgmr.msra.gmra.mxu1 %vm401_vm9, %v598_v23 }
 0x133   : > { %v452_v41 = vpop.f32.mrf.mxu2 }
 0x134   : > { %v458_v42 = vpack.c.bf16 %v452_v41, %v452_v41 }
 0x136   : > { %462 = vst.msk [vmem:[%s160_s5 + $0x8] sm:$0xf] %vm165_vm0, %v458_v42 }
 0x13b   : > { %v454_v43 = vpop.f32.mrf.mxu2 }
 0x13c   : > { %v424_v44 = vpop.f32.mrf.mxu0  ;;  %v438_v45 = vpop.f32.mrf.mxu1  ;;  %v460_v46 = vpack.c.bf16 %v454_v43, %v454_v43 }
 0x13d   : > { %v457_v47 = vpack.c.bf16 %v438_v45, %v424_v44 }
 0x13e   : > { %464 = vst.msk [vmem:[%s160_s5 + $0x14] sm:$0xf] %vm165_vm0, %v460_v46 }
 0x13f   : > { %461 = vst [vmem:[%s160_s5] sm:$0xff] %v457_v47 }
 0x144   : > { %v426_v48 = vpop.f32.mrf.mxu0  ;;  %v440_v49 = vpop.f32.mrf.mxu1 }
 0x145   : > { %v459_v50 = vpack.c.bf16 %v440_v49, %v426_v48 }
 0x147   : > { %463 = vst [vmem:[%s160_s5 + $0xc] sm:$0xff] %v459_v50 }
 0x148 PF: > { %s13_s9 = sadd.s32 1, %s682_s9  }
 0x149   : > { %p10_p7 = scmp.ge.s32.totalorder %s13_s9, 4  }
 0x14b   :  { %12 = sbr.rel (!%p10_p7) target bundleno = 1 (0x1), region = 63 }
 0x150   :  { %486 = vsyncpa [#allocation4], 1 }
 0x151   :  { %488 = vsyncpa [#allocation4 + $0x1], 1 }

// kernel: a_call__.3
= control target key start
LH: loop header
LB: loop body
LE: loop exit
PB: predicated region body
PF: predicated region fallthrough
CT: control target
= control target key end

     0   :  { %7 = vsyncpa [#allocation4], 0  ;;  %s1336_s9 = smov 0   ;;  %s1654_s0 = inlined_call_operand.vmem [shape: bf16[2,8,1280], index: 0, kind: input, shape index: {}]   ;;  %s1655_s1 = inlined_call_operand.hbm [shape: bf16[16,72], index: 1, kind: input, shape index: {}]   ;;  %s1656_s2 = inlined_call_operand.vmem [shape: f32[2,16,1088], index: 2, kind: output, shape index: {}]  }
   0x1 LB: > { %s102_s12 = sshll.u32 %s1655_s1, 4  ;;  %s1032_s13 = sadd.s32 4294967295, %s1308_s9   ;;  %s1308_s9 = sphi %s1336_s9, %s13_s9   ;;  %s103_s12 = int_to_ptr.hbm [resolvable:$true] %s102_s12 }
   0x2   : > { %p1034_p0 = scmp.ge.s32.totalorder %s1308_s9, 1  ;;  %p91_p1 = scmp.lt.s32.totalorder %s1308_s9, 3 }
   0x3   : > { %p1247_p2 = scmp.eq.s32.totalorder %s1032_s13, 0  ;;  %s1310_s14 = smov [#allocation3]  }
   0x4   : > { %p92_p3 = pnand %p1034_p0, %p91_p1  ;;  %s104_s15 = sshll.u32 %s1310_s14, 4  ;;  %s105_s15 = int_to_ptr.vmem [resolvable:$true] %s104_s15 }
   0x5   : > { %s1311_s16 = smov 64   ;;  %s1312_s17 = smov 4  }
   0x6   : > { %p1243_p4 = pneg %p92_p3  ;;  %128 = sbr.rel (%p92_p3) target bundleno = 397 (0x18d), region = 28 }
   0x8   : > { %p1244_p5 = pnand %p1247_p2, %p1243_p4 }
   0xa   : > { %1246 = dma.hbm_to_vmem [thread:$0]  (!%p1244_p5), %s103_s12, 128, %s105_s15, [#allocation4], %s1311_s16, %s1311_s16, %s1312_s17  }
   0xb   : > { %1303 = dma.done.wait (%p1247_p2), [#allocation4], 128  }
   0xc   : > { %1305 = vsyncadd (%p1247_p2), [#allocation4], 4294967168  ;;  %p151_p6 = scmp.lt.s32.totalorder %s1032_s13, 1  ;;  %s1313_s22 = smov 58   ;;  %vm198_vm0 = vcmask 1043456   ;;  %vm465_vm1 = vcmask 482304  }
   0xd   : > { %s1314_s23 = smov 59   ;;  %s1315_s24 = smov 60   ;;  %vm510_vm2 = vcmask 474112   ;;  %vm420_vm3 = vcmask 490496   ;;  %vm332_vm4 = vcmask 760832   ;;  %vm376_vm5 = vcmask 752640  }
   0xe   : > { %s1658_s13 = smov (!%p151_p6, %s1032_s13), 1  ;;  %s1316_s25 = smov 93   ;;  %vm244_vm6 = vcmask 1031168   ;;  %vm288_vm7 = vcmask 769024   ;;  %vm171_vm8 = vcmask 519168   ;;  %vm200_vm9 = vcmask 1039360  }
   0xf   : > { %s1237_s18 = smul.u32 40, %s1658_s13  ;;  %s1317_s26 = smov 92   ;;  %vm788_vm10 = vcmask 588800   ;;  %vm954_vm11 = vcmask 523264  }
  0x10   : > { %s1318_s27 = smov 126   ;;  %s1319_s28 = smov 94  }
  0x11   : > { %s1353_s21 = scalar_lea.vmem %s1654_s0, %s1237_s18  ;;  %s1320_s29 = smov 127  }
  0x12   : > { %v484_v0 = vld [vmem:[%s1353_s21] sm:$0xff]  ;;  %v485_v1 = vld [vmem:[%s1353_s21 + $0x8] sm:$0xff]  ;;  %v486_v2 = vld [vmem:[%s1353_s21 + $0x10] sm:$0xff]  ;;  %s1238_s30 = smul.u32 144, %s1658_s13 }
  0x13   : > { %494 = vrot.lane.b32.xlu0 %v484_v0, %s1313_s22  ;;  %449 = vrot.lane.b32.xlu2 %v484_v0, %s1314_s23  ;;  %167 = vst [vmem:[#allocation2] sm:$0xff] %v484_v0  ;;  %v487_v3 = vld [vmem:[%s1353_s21 + $0x18] sm:$0xff]  ;;  %v488_v4 = vld [vmem:[%s1353_s21 + $0x20] sm:$0xff] }
  0x14   : > { %404 = vrot.lane.b32.xlu1 %v484_v0, %s1315_s24  ;;  %168 = vst [vmem:[#allocation2 + $0x8] sm:$0xff] %v485_v1  ;;  %v310_v5 = vld [vmem:[%s1353_s21 + $0x20] sm:$0xf]  ;;  %s1631_s5 = scalar_lea.vmem %s1656_s2, %s1238_s30 }
  0x15   : > { %169 = vst [vmem:[#allocation2 + $0x10] sm:$0xff] %v486_v2  ;;  %v354_v7 = vld [vmem:[%s1353_s21 + $0x20] sm:$0xf] }
  0x16   : > { %170 = vst [vmem:[#allocation2 + $0x18] sm:$0xff] %v487_v3  ;;  %v266_v8 = vld [vmem:[%s1353_s21 + $0x20] sm:$0xf] }
  0x17   : > { %v222_v9 = vld [vmem:[%s1353_s21 + $0x20] sm:$0xf] }
  0x18   : > { %v177_v14 = vld [vmem:[%s1353_s21 + $0x20] sm:$0xf] }
  0x1b   : > { %496 = vrot.lane.b32.xlu0 %v485_v1, %s1313_s22  ;;  %451 = vrot.lane.b32.xlu2 %v485_v1, %s1314_s23 }
  0x1c   : > { %406 = vrot.lane.b32.xlu1 %v485_v1, %s1315_s24 }
  0x23   : > { %498 = vrot.lane.b32.xlu0 %v486_v2, %s1313_s22  ;;  %318 = vrot.lane.b32.xlu2 %v485_v1, %s1316_s25 }
  0x24   : > { %316 = vrot.lane.b32.xlu1 %v484_v0, %s1316_s25 }
  0x2b   : > { %360 = vrot.lane.b32.xlu0 %v484_v0, %s1317_s26  ;;  %228 = vrot.lane.b32.xlu2 %v484_v0, %s1318_s27 }
  0x2c   : > { %362 = vrot.lane.b32.xlu1 %v485_v1, %s1317_s26 }
  0x33   : > { %230 = vrot.lane.b32.xlu0 %v485_v1, %s1318_s27  ;;  %274 = vrot.lane.b32.xlu2 %v485_v1, %s1319_s28 }
  0x34   : > { %272 = vrot.lane.b32.xlu1 %v484_v0, %s1319_s28 }
  0x3b   : > { %500 = vrot.lane.b32.xlu0 %v487_v3, %s1313_s22  ;;  %453 = vrot.lane.b32.xlu2 %v486_v2, %s1314_s23 }
  0x3c   : > { %408 = vrot.lane.b32.xlu1 %v486_v2, %s1315_s24 }
  0x43   : > { %320 = vrot.lane.b32.xlu2 %v486_v2, %s1316_s25  ;;  %183 = vrot.lane.b32.xlu0 %v484_v0, %s1320_s29 }
  0x44   : > { %185 = vrot.lane.b32.xlu1 %v485_v1, %s1320_s29 }
  0x4b   : > { %455 = vrot.lane.b32.xlu2 %v487_v3, %s1314_s23  ;;  %364 = vrot.lane.b32.xlu0 %v486_v2, %s1317_s26 }
  0x4c   : > { %410 = vrot.lane.b32.xlu1 %v487_v3, %s1315_s24 }
  0x53   : > { %502 = vrot.lane.b32.xlu2 %v488_v4, %s1313_s22  ;;  %232 = vrot.lane.b32.xlu0 %v486_v2, %s1318_s27 }
  0x54   : > { %276 = vrot.lane.b32.xlu1 %v486_v2, %s1319_s28 }
  0x5b   : > { %322 = vrot.lane.b32.xlu0 %v487_v3, %s1316_s25  ;;  %187 = vrot.lane.b32.xlu2 %v486_v2, %s1320_s29 }
  0x5c   : > { %366 = vrot.lane.b32.xlu1 %v487_v3, %s1317_s26 }
  0x63   : > { %234 = vrot.lane.b32.xlu0 %v487_v3, %s1318_s27  ;;  %412 = vrot.lane.b32.xlu2 %v488_v4, %s1315_s24 }
  0x64   : > { %278 = vrot.lane.b32.xlu1 %v487_v3, %s1319_s28 }
  0x6b   : > { %457 = vrot.lane.b32.xlu0 %v488_v4, %s1314_s23  ;;  %324 = vrot.lane.b32.xlu2 %v310_v5, %s1316_s25 }
  0x6c   : > { %189 = vrot.lane.b32.xlu1 %v487_v3, %s1320_s29 }
  0x6d   : > { %v450_v6 = vpop.permute.xlu2 %449 }
  0x6e   : > { %v459_v10 = vrot.slane %v450_v6, 4 }
  0x73   : > { %368 = vrot.lane.b32.xlu0 %v354_v7, %s1317_s26  ;;  %280 = vrot.lane.b32.xlu2 %v266_v8, %s1319_s28 }
  0x74   : > { %236 = vrot.lane.b32.xlu1 %v222_v9, %s1318_s27 }
  0x75   : > { %v452_v11 = vpop.permute.xlu2 %451 }
  0x76   : > { %v460_v12 = vrot.slane %v452_v11, 4 }
  0x78   : > { %v464_v13 = vsel %vm198_vm0, %v459_v10, %v460_v12 }
  0x79   : > { %v466_v15 = vsel %vm465_vm1, %v450_v6, %v464_v13 }
  0x7a   : > { %479 = vst [vmem:[#allocation2 + $0xfc] sm:$0xff] %v466_v15 }
  0x7b   : > { %191 = vrot.lane.b32.xlu0 %v177_v14, %s1320_s29 }
  0x7d   : > { %v1407_v16 = vpop.permute.xlu2 %318 }
  0x7e   : > { %v327_v35 = vrot.slane %v1407_v16, 4 }
  0x81   : > { %v1232_v49 = vld [vmem:[#allocation2 + $0xf8] sm:$0xf0]  ;;  %v1157_v50 = vld [vmem:[#allocation2 + $0xfc] sm:$0xf0] }
  0x85   : > { %v495_v17 = vpop.permute.xlu0 %494  ;;  %v1409_v18 = vpop.permute.xlu2 %228 }
  0x86   : > { %v405_v19 = vpop.permute.xlu1 %404  ;;  %v504_v22 = vrot.slane %v495_v17, 4 }
  0x87   : > { %v414_v25 = vrot.slane %v405_v19, 4 }
  0x8d   : > { %v497_v20 = vpop.permute.xlu0 %496  ;;  %v1411_v21 = vpop.permute.xlu2 %274 }
  0x8e   : > { %v505_v23 = vrot.slane %v497_v20, 4  ;;  %v1413_v24 = vpop.permute.xlu1 %406  ;;  %v283_v8 = vrot.slane %v1411_v21, 4 }
  0x8f   : > { %v415_v26 = vrot.slane %v1413_v24, 4 }
  0x90   : > { %v509_v27 = vsel %vm198_vm0, %v504_v22, %v505_v23 }
  0x91   : > { %v511_v28 = vsel %vm510_vm2, %v495_v17, %v509_v27  ;;  %v419_v29 = vsel %vm198_vm0, %v414_v25, %v415_v26 }
  0x92   : > { %v421_v30 = vsel %vm420_vm3, %v405_v19, %v419_v29  ;;  %v698_v31 = vunpack.c.l.b16 %v511_v28  ;;  %v699_v32 = vunpack.c.h.b16 %v511_v28 }
  0x93   : > { %434 = vst [vmem:[#allocation2 + $0xd8] sm:$0xff] %v421_v30 }
  0x94   : > { %v743_v33 = vpack.c.b16 %v698_v31, %v698_v31  ;;  %v744_v34 = vpack.c.b16 %v699_v32, %v699_v32 }
  0x95   : > { %v1423_v36 = vpop.permute.xlu0 %498  ;;  %v454_v37 = vpop.permute.xlu2 %453 }
  0x96   : > { %v506_v38 = vrot.slane %v1423_v36, 4  ;;  %v317_v39 = vpop.permute.xlu1 %316  ;;  %v461_v40 = vrot.slane %v454_v37, 4  ;;  %v794_v41 = vsel %vm198_vm0, %v743_v33, 0  ;;  %v797_v42 = vsel %vm198_vm0, %v744_v34, 0 }
  0x97   : > { %v326_v43 = vrot.slane %v317_v39, 4  ;;  %823 = vmatpush.bf16.msra.mxu0 %v794_v41  ;;  %837 = vmatpush.bf16.msra.mxu1 %v797_v42 }
  0x98   : > { %v512_v44 = vsel %vm198_vm0, %v505_v23, %v506_v38  ;;  %v467_v45 = vsel %vm198_vm0, %v460_v12, %v461_v40 }
  0x99   : > { %v513_v46 = vsel %vm510_vm2, %v497_v20, %v512_v44  ;;  %v331_v47 = vsel %vm198_vm0, %v326_v43, %v327_v35  ;;  %v468_v48 = vsel %vm465_vm1, %v452_v11, %v467_v45  ;;  %v238_v11 = vrot.slane %v1409_v18, 4 }
  0x9a   : > { %v333_v51 = vsel %vm332_vm4, %v317_v39, %v331_v47  ;;  %v1155_v52 = vld [vmem:[#allocation2 + $0xd8] sm:$0xf]  ;;  %v1228_v53 = vld [vmem:[#allocation2 + $0xdc] sm:$0xf]  ;;  %v700_v54 = vunpack.c.l.b16 %v513_v46  ;;  %v701_v55 = vunpack.c.h.b16 %v513_v46  ;;  %480 = vst [vmem:[#allocation2 + $0x104] sm:$0xff] %v468_v48 }
  0x9b   : > { %345 = vst [vmem:[#allocation2 + $0x90] sm:$0xff] %v333_v51  ;;  %v1156_v56 = vor.u32 %v1232_v49, %v1155_v52  ;;  %v1160_v57 = vor.u32 %v1228_v53, %v1157_v50 }
  0x9c   : > { %v745_v58 = vpack.c.b16 %v700_v54, %v700_v54  ;;  %v746_v59 = vpack.c.b16 %v701_v55, %v701_v55 }
  0x9d   : > { %v361_v60 = vpop.permute.xlu0 %360  ;;  %v1436_v61 = vpop.permute.xlu2 %320  ;;  %824 = vmatpush.bf16.msra.mxu0 %v1156_v56  ;;  %838 = vmatpush.bf16.msra.mxu1 %v1160_v57 }
  0x9e   : > { %v370_v62 = vrot.slane %v361_v60, 4  ;;  %v1438_v63 = vpop.permute.xlu1 %362  ;;  %v328_v0 = vrot.slane %v1436_v61, 4  ;;  %v800_v1 = vsel %vm198_vm0, %v745_v58, 0  ;;  %v803_v2 = vsel %vm198_vm0, %v746_v59, 0 }
  0x9f   : > { %v371_v3 = vrot.slane %v1438_v63, 4  ;;  %851 = vmatpush.bf16.msra.mxu2 %v800_v1  ;;  %865 = vmatpush.bf16.msra.mxu3 %v803_v2 }
  0xa0   : > { %v334_v4 = vsel %vm198_vm0, %v327_v35, %v328_v0 }
  0xa1   : > { %v375_v5 = vsel %vm198_vm0, %v370_v62, %v371_v3  ;;  %v335_v6 = vsel %vm332_vm4, %v1407_v16, %v334_v4  ;;  %v1233_v56 = vld [vmem:[#allocation2 + $0x100] sm:$0xf0]  ;;  %v1165_v62 = vld [vmem:[#allocation2 + $0x104] sm:$0xf0] }
  0xa2   : > { %v377_v7 = vsel %vm376_vm5, %v361_v60, %v375_v5  ;;  %346 = vst [vmem:[#allocation2 + $0x98] sm:$0xff] %v335_v6  ;;  %v1119_v23 = vld [vmem:[#allocation2 + $0x90] sm:$0xf]  ;;  %v1219_v25 = vld [vmem:[#allocation2 + $0x94] sm:$0xf] }
  0xa3   : > { %389 = vst [vmem:[#allocation2 + $0xb4] sm:$0xff] %v377_v7 }
  0xa5   : > { %v1454_v9 = vpop.permute.xlu0 %230  ;;  %v1456_v10 = vpop.permute.xlu2 %455 }
  0xa6   : > { %v273_v12 = vpop.permute.xlu1 %272  ;;  %v239_v13 = vrot.slane %v1454_v9, 4  ;;  %v462_v14 = vrot.slane %v1456_v10, 4 }
  0xa7   : > { %v282_v15 = vrot.slane %v273_v12, 4 }
  0xa8   : > { %v243_v16 = vsel %vm198_vm0, %v238_v11, %v239_v13  ;;  %v469_v17 = vsel %vm198_vm0, %v461_v40, %v462_v14 }
  0xa9   : > { %v287_v19 = vsel %vm198_vm0, %v282_v15, %v283_v8  ;;  %v245_v20 = vsel %vm244_vm6, %v1409_v18, %v243_v16  ;;  %v470_v22 = vsel %vm465_vm1, %v454_v37, %v469_v17 }
  0xaa   : > { %v289_v27 = vsel %vm288_vm7, %v273_v12, %v287_v19  ;;  %257 = vst [vmem:[#allocation2 + $0x48] sm:$0xff] %v245_v20  ;;  %v1223_v28 = vld [vmem:[#allocation2 + $0xb0] sm:$0xf0]  ;;  %v1121_v29 = vld [vmem:[#allocation2 + $0xb4] sm:$0xf0] }
  0xab   : > { %301 = vst [vmem:[#allocation2 + $0x6c] sm:$0xff] %v289_v27  ;;  %v1120_v30 = vor.u32 %v1223_v28, %v1119_v23  ;;  %v1124_v31 = vor.u32 %v1219_v25, %v1121_v29  ;;  %v1047_v20 = vld [vmem:[#allocation2] sm:$0xf] }
  0xac   : > { %481 = vst [vmem:[#allocation2 + $0x10c] sm:$0xff] %v470_v22  ;;  %v1201_v22 = vld [vmem:[#allocation2 + $0x4] sm:$0xf] }
  0xad   : > { %825 = vmatpush.bf16.msra.mxu0 %v1120_v30  ;;  %839 = vmatpush.bf16.msra.mxu1 %v1124_v31  ;;  %v501_v32 = vpop.permute.xlu0 %500  ;;  %v503_v33 = vpop.permute.xlu2 %502 }
  0xae   : > { %v409_v34 = vpop.permute.xlu1 %408  ;;  %v507_v35 = vrot.slane %v501_v32, 4  ;;  %v508_v18 = vrot.slane %v503_v33, 4 }
  0xaf   : > { %v416_v37 = vrot.slane %v409_v34, 4 }
  0xb0   : > { %v514_v39 = vsel %vm198_vm0, %v506_v38, %v507_v35  ;;  %v516_v40 = vsel %vm198_vm0, %v507_v35, %v508_v18  ;;  %v518_v41 = vsel %vm510_vm2, %v503_v33, %v508_v18  ;;  %v1515_v18 = vld [vmem:[#allocation3] sm:$0xff] }
  0xb1   : > { %v422_v42 = vsel %vm198_vm0, %v415_v26, %v416_v37  ;;  %v515_v43 = vsel %vm510_vm2, %v1423_v36, %v514_v39  ;;  %v1485_v44 = vsel %vm510_vm2, %v501_v32, %v516_v40  ;;  %528 = vst.msk [vmem:[#allocation2 + $0x140] sm:$0xf] %vm171_vm8, %v518_v41  ;;  %v1083_v45 = vld [vmem:[#allocation2 + $0x48] sm:$0xf]  ;;  %v1210_v46 = vld [vmem:[#allocation2 + $0x4c] sm:$0xf] }
  0xb2   : > { %v423_v38 = vsel %vm420_vm3, %v1413_v24, %v422_v42  ;;  %v1214_v47 = vld [vmem:[#allocation2 + $0x68] sm:$0xf0]  ;;  %v1085_v48 = vld [vmem:[#allocation2 + $0x6c] sm:$0xf0]  ;;  %v702_v4 = vunpack.c.l.b16 %v515_v43  ;;  %v703_v7 = vunpack.c.h.b16 %v515_v43 }
  0xb3   : > { %435 = vst [vmem:[#allocation2 + $0xe0] sm:$0xff] %v423_v38  ;;  %v1084_v49 = vor.u32 %v1214_v47, %v1083_v45  ;;  %v1088_v50 = vor.u32 %v1210_v46, %v1085_v48  ;;  %v1127_v45 = vld [vmem:[#allocation2 + $0x98] sm:$0xf]  ;;  %v1220_v46 = vld [vmem:[#allocation2 + $0x9c] sm:$0xf] }
  0xb4   : > { %v747_v23 = vpack.c.b16 %v702_v4, %v702_v4  ;;  %v748_v29 = vpack.c.b16 %v703_v7, %v703_v7  ;;  %v1234_v38 = vld [vmem:[#allocation2 + $0x108] sm:$0xf0] }
  0xb5   : > { %826 = vmatpush.bf16.msra.mxu0 %v1084_v49  ;;  %840 = vmatpush.bf16.msra.mxu1 %v1088_v50  ;;  %v184_v26 = vpop.permute.xlu0 %183  ;;  %v1490_v51 = vpop.permute.xlu2 %187  ;;  %v1173_v50 = vld [vmem:[#allocation2 + $0x10c] sm:$0xf0] }
  0xb6   : > { %v186_v36 = vpop.permute.xlu1 %185  ;;  %v193_v52 = vrot.slane %v184_v26, 4  ;;  %v195_v53 = vrot.slane %v1490_v51, 4  ;;  %v809_v39 = vsel %vm198_vm0, %v748_v29, 0 }
  0xb7   : > { %v194_v54 = vrot.slane %v186_v36, 4 }
  0xb9   : > { %v199_v55 = vsel %vm198_vm0, %v193_v52, %v194_v54  ;;  %v202_v24 = vsel %vm198_vm0, %v194_v54, %v195_v53 }
  0xba   : > { %v201_v57 = vsel %vm200_vm9, %v184_v26, %v199_v55  ;;  %v203_v58 = vsel %vm200_vm9, %v186_v36, %v202_v24  ;;  %v1163_v59 = vld [vmem:[#allocation2 + $0xe0] sm:$0xf]  ;;  %v1229_v60 = vld [vmem:[#allocation2 + $0xe4] sm:$0xf] }
  0xbb   : > { %213 = vst [vmem:[#allocation2 + $0x24] sm:$0xff] %v201_v57  ;;  %v1164_v1 = vor.u32 %v1233_v56, %v1163_v59  ;;  %v1168_v2 = vor.u32 %v1229_v60, %v1165_v62  ;;  %v166_v60 = vld [vmem:[%s1353_s21 + $0x20] sm:$0xf] }
  0xbc   : > { %214 = vst [vmem:[#allocation2 + $0x2c] sm:$0xff] %v203_v58 }
  0xbd   : > { %852 = vmatpush.bf16.msra.mxu2 %v1164_v1  ;;  %866 = vmatpush.bf16.msra.mxu3 %v1168_v2  ;;  %v1499_v5 = vpop.permute.xlu0 %364  ;;  %v413_v6 = vpop.permute.xlu2 %412  ;;  %v704_v2 = vunpack.c.l.b16 %v1485_v44  ;;  %172 = vst.msk [vmem:[#allocation2 + $0x20] sm:$0xf] %vm171_vm8, %v166_v60 }
  0xbe   : > { %v411_v11 = vpop.permute.xlu1 %410  ;;  %v372_v12 = vrot.slane %v1499_v5, 4  ;;  %v418_v15 = vrot.slane %v413_v6, 4 }
  0xbf   : > { %v417_v16 = vrot.slane %v411_v11, 4 }
  0xc0   : > { %v378_v17 = vsel %vm198_vm0, %v371_v3, %v372_v12  ;;  %v428_v19 = vsel %vm420_vm3, %v413_v6, %v418_v15 }
  0xc1   : > { %v424_v25 = vsel %vm198_vm0, %v416_v37, %v417_v16  ;;  %v379_v27 = vsel %vm376_vm5, %v1438_v63, %v378_v17  ;;  %v426_v28 = vsel %vm198_vm0, %v417_v16, %v418_v15  ;;  %438 = vst.msk [vmem:[#allocation2 + $0xf8] sm:$0xf] %vm171_vm8, %v428_v19  ;;  %v806_v37 = vsel %vm198_vm0, %v747_v23, 0  ;;  %v1055_v23 = vld [vmem:[#allocation2 + $0x8] sm:$0xf] }
  0xc2   : > { %v425_v30 = vsel %vm420_vm3, %v409_v34, %v424_v25  ;;  %390 = vst [vmem:[#allocation2 + $0xbc] sm:$0xff] %v379_v27  ;;  %v427_v3 = vsel %vm420_vm3, %v411_v11, %v426_v28  ;;  %v1205_v31 = vld [vmem:[#allocation2 + $0x20] sm:$0xf0]  ;;  %v1049_v32 = vld [vmem:[#allocation2 + $0x24] sm:$0xf0]  ;;  %v749_v27 = vpack.c.b16 %v704_v2, %v704_v2 }
  0xc3   : > { %436 = vst [vmem:[#allocation2 + $0xe8] sm:$0xff] %v425_v30  ;;  %v1048_v33 = vor.u32 %v1205_v31, %v1047_v20  ;;  %v1052_v35 = vor.u32 %v1201_v22, %v1049_v32  ;;  %v1206_v25 = vld [vmem:[#allocation2 + $0x28] sm:$0xf0]  ;;  %v1063_v2 = vld [vmem:[#allocation2 + $0x10] sm:$0xf] }
  0xc4   : > { %437 = vst [vmem:[#allocation2 + $0xf0] sm:$0xff] %v427_v3  ;;  %v1056_v31 = vor.u32 %v1206_v25, %v1055_v23 }
  0xc5   : > { %827 = vmatpush.bf16.msra.mxu0 %v1048_v33  ;;  %841 = vmatpush.bf16.msra.mxu1 %v1052_v35  ;;  %v1517_v63 = vpop.permute.xlu0 %232  ;;  %v325_v34 = vpop.permute.xlu2 %324  ;;  %v812_v35 = vsel %vm198_vm0, %v749_v27, 0 }
  0xc6   : > { %v1521_v40 = vpop.permute.xlu1 %276  ;;  %v240_v41 = vrot.slane %v1517_v63, 4  ;;  %349 = vst.msk [vmem:[#allocation2 + $0xb0] sm:$0xf] %vm171_vm8, %v325_v34 }
  0xc7   : > { %v284_v42 = vrot.slane %v1521_v40, 4 }
  0xc8   : > { %v246_v43 = vsel %vm198_vm0, %v239_v13, %v240_v41  ;;  %1189 = vmatmul.msk.bf16.vlgmr.msra.gmra.mxu0 %vm788_vm10, %v1515_v18  ;;  %1190 = vmatmul.msk.bf16.vlgmr.msra.gmra.mxu1 %vm788_vm10, %v1515_v18 }
  0xc9   : > { %879 = vmatpush.bf16.msrb.mxu0 %v806_v37  ;;  %893 = vmatpush.bf16.msrb.mxu1 %v809_v39  ;;  %v290_v47 = vsel %vm198_vm0, %v283_v8, %v284_v42  ;;  %v247_v48 = vsel %vm244_vm6, %v1454_v9, %v246_v43  ;;  %v1224_v49 = vld [vmem:[#allocation2 + $0xb8] sm:$0xf0]  ;;  %v1129_v13 = vld [vmem:[#allocation2 + $0xbc] sm:$0xf0]  ;;  %v330_v8 = vrot.slane %v325_v34, 4 }
  0xca   : > { %v291_v26 = vsel %vm288_vm7, %v1411_v21, %v290_v47  ;;  %258 = vst [vmem:[#allocation2 + $0x50] sm:$0xff] %v247_v48  ;;  %v1128_v36 = vor.u32 %v1224_v49, %v1127_v45  ;;  %v1132_v52 = vor.u32 %v1220_v46, %v1129_v13  ;;  %v1171_v54 = vld [vmem:[#allocation2 + $0xe8] sm:$0xf]  ;;  %v1230_v55 = vld [vmem:[#allocation2 + $0xec] sm:$0xf] }
  0xcb   : > { %302 = vst [vmem:[#allocation2 + $0x74] sm:$0xff] %v291_v26  ;;  %v1172_v24 = vor.u32 %v1234_v38, %v1171_v54  ;;  %v1176_v56 = vor.u32 %v1230_v55, %v1173_v50 }
  0xcc   : > { %853 = vmatpush.bf16.msra.mxu2 %v1128_v36  ;;  %867 = vmatpush.bf16.msra.mxu3 %v1132_v52  ;;  %v575_v52 = vld [vmem:[#allocation2 + $0x140] sm:$0xf] }
  0xcd   : > { %880 = vmatpush.bf16.msrb.mxu0 %v1172_v24  ;;  %894 = vmatpush.bf16.msrb.mxu1 %v1176_v56  ;;  %v323_v9 = vpop.permute.xlu0 %322  ;;  %v281_v57 = vpop.permute.xlu2 %280 }
  0xce   : > { %v1544_v58 = vpop.permute.xlu1 %366  ;;  %v329_v59 = vrot.slane %v323_v9, 4  ;;  %305 = vst.msk [vmem:[#allocation2 + $0x8c] sm:$0xf] %vm171_vm8, %v281_v57 }
  0xcf   : > { %v373_v21 = vrot.slane %v1544_v58, 4 }
  0xd0   : > { %v336_v62 = vsel %vm198_vm0, %v328_v0, %v329_v59  ;;  %v338_v1 = vsel %vm198_vm0, %v329_v59, %v330_v8  ;;  %v705_v0 = vunpack.c.h.b16 %v1485_v44  ;;  %v286_v44 = vrot.slane %v281_v57, 4 }
  0xd1   : > { %v380_v4 = vsel %vm198_vm0, %v372_v12, %v373_v21  ;;  %v337_v6 = vsel %vm332_vm4, %v1436_v61, %v336_v62  ;;  %v339_v7 = vsel %vm332_vm4, %v323_v9, %v338_v1  ;;  %v1091_v11 = vld [vmem:[#allocation2 + $0x50] sm:$0xf]  ;;  %v1211_v15 = vld [vmem:[#allocation2 + $0x54] sm:$0xf]  ;;  %v1202_v12 = vld [vmem:[#allocation2 + $0xc] sm:$0xf] }
  0xd2   : > { %v381_v16 = vsel %vm376_vm5, %v1499_v5, %v380_v4  ;;  %347 = vst [vmem:[#allocation2 + $0xa0] sm:$0xff] %v337_v6  ;;  %v1215_v17 = vld [vmem:[#allocation2 + $0x70] sm:$0xf0]  ;;  %v1093_v19 = vld [vmem:[#allocation2 + $0x74] sm:$0xf0]  ;;  %v750_v29 = vpack.c.b16 %v705_v0, %v705_v0 }
  0xd3   : > { %391 = vst [vmem:[#allocation2 + $0xc4] sm:$0xff] %v381_v16  ;;  %v1092_v20 = vor.u32 %v1215_v17, %v1091_v11  ;;  %v1096_v22 = vor.u32 %v1211_v15, %v1093_v19  ;;  %v1057_v61 = vld [vmem:[#allocation2 + $0x2c] sm:$0xf0]  ;;  %v1203_v4 = vld [vmem:[#allocation2 + $0x14] sm:$0xf] }
  0xd4   : > { %348 = vst [vmem:[#allocation2 + $0xa8] sm:$0xff] %v339_v7  ;;  %v1060_v32 = vor.u32 %v1202_v12, %v1057_v61  ;;  %v815_v43 = vsel %vm198_vm0, %v750_v29, 0  ;;  %v1179_v6 = vld [vmem:[#allocation2 + $0xf0] sm:$0xf]  ;;  %v1231_v0 = vld [vmem:[#allocation2 + $0xf4] sm:$0xf] }
  0xd5   : > { %854 = vmatpush.bf16.msra.mxu2 %v1092_v20  ;;  %868 = vmatpush.bf16.msra.mxu3 %v1096_v22  ;;  %v1566_v28 = vpop.permute.xlu0 %234 }
  0xd6   : > { %v279_v30 = vpop.permute.xlu1 %278  ;;  %v241_v5 = vrot.slane %v1566_v28, 4 }
  0xd7   : > { %v285_v3 = vrot.slane %v279_v30, 4 }
  0xd8   : > { %v248_v33 = vsel %vm198_vm0, %v240_v41, %v241_v5 }
  0xd9   : > { %v292_v37 = vsel %vm198_vm0, %v284_v42, %v285_v3  ;;  %v249_v39 = vsel %vm244_vm6, %v1517_v63, %v248_v33  ;;  %v294_v34 = vsel %vm198_vm0, %v285_v3, %v286_v44  ;;  %855 = vmatpush.bf16.msra.mxu2 %v1056_v31  ;;  %869 = vmatpush.bf16.msra.mxu3 %v1060_v32  ;;  %v1135_v45 = vld [vmem:[#allocation2 + $0xa0] sm:$0xf]  ;;  %v1221_v46 = vld [vmem:[#allocation2 + $0xa4] sm:$0xf] }
  0xda   : > { %v293_v41 = vsel %vm288_vm7, %v1521_v40, %v292_v37  ;;  %259 = vst [vmem:[#allocation2 + $0x58] sm:$0xff] %v249_v39  ;;  %v295_v38 = vsel %vm288_vm7, %v279_v30, %v294_v34  ;;  %v1225_v42 = vld [vmem:[#allocation2 + $0xc0] sm:$0xf0]  ;;  %v1137_v47 = vld [vmem:[#allocation2 + $0xc4] sm:$0xf0] }
  0xdb   : > { %303 = vst [vmem:[#allocation2 + $0x7c] sm:$0xff] %v293_v41  ;;  %v1136_v63 = vor.u32 %v1225_v42, %v1135_v45  ;;  %v1140_v48 = vor.u32 %v1221_v46, %v1137_v47  ;;  %v1222_v3 = vld [vmem:[#allocation2 + $0xac] sm:$0xf]  ;;  %v1151_v34 = vld [vmem:[#allocation2 + $0xb0] sm:$0xf] }
  0xdc   : > { %304 = vst [vmem:[#allocation2 + $0x84] sm:$0xff] %v295_v38  ;;  %1191 = vmatmul.msk.bf16.vlgmr.msra.gmra.mxu2 %vm788_vm10, %v1515_v18  ;;  %1192 = vmatmul.msk.bf16.vlgmr.msra.gmra.mxu3 %vm788_vm10, %v1515_v18  ;;  %v1218_v41 = vld [vmem:[#allocation2 + $0x88] sm:$0xf0] }
  0xdd   : > { %907 = vmatpush.bf16.msrb.mxu2 %v812_v35  ;;  %921 = vmatpush.bf16.msrb.mxu3 %v815_v43  ;;  %v458_v40 = vpop.permute.xlu0 %457 }
  0xde   : > { %881 = vmatpush.bf16.msrb.mxu0 %v1136_v63  ;;  %895 = vmatpush.bf16.msrb.mxu1 %v1140_v48  ;;  %v1587_v49 = vpop.permute.xlu1 %189  ;;  %v463_v13 = vrot.slane %v458_v40, 4 }
  0xdf   : > { %v196_v50 = vrot.slane %v1587_v49, 4 }
  0xe0   : > { %v471_v26 = vsel %vm198_vm0, %v462_v14, %v463_v13  ;;  %v473_v36 = vsel %vm465_vm1, %v458_v40, %v463_v13  ;;  %v1071_v40 = vld [vmem:[#allocation2 + $0x18] sm:$0xf] }
  0xe1   : > { %v204_v54 = vsel %vm198_vm0, %v195_v53, %v196_v50  ;;  %v472_v55 = vsel %vm465_vm1, %v1456_v10, %v471_v26  ;;  %483 = vst.msk [vmem:[#allocation2 + $0x11c] sm:$0xf] %vm171_vm8, %v473_v36  ;;  %v1099_v24 = vld [vmem:[#allocation2 + $0x58] sm:$0xf]  ;;  %v1212_v56 = vld [vmem:[#allocation2 + $0x5c] sm:$0xf]  ;;  %v706_v53 = vunpack.c.l.b16 %v575_v52 }
  0xe2   : > { %v205_v8 = vsel %vm200_vm9, %v1490_v51, %v204_v54  ;;  %482 = vst [vmem:[#allocation2 + $0x114] sm:$0xff] %v472_v55  ;;  %v1216_v9 = vld [vmem:[#allocation2 + $0x78] sm:$0xf0]  ;;  %v1101_v14 = vld [vmem:[#allocation2 + $0x7c] sm:$0xf0] }
  0xe3   : > { %215 = vst [vmem:[#allocation2 + $0x34] sm:$0xff] %v205_v8  ;;  %v1100_v57 = vor.u32 %v1216_v9, %v1099_v24  ;;  %v1104_v59 = vor.u32 %v1212_v56, %v1101_v14  ;;  %v751_v17 = vpack.c.b16 %v706_v53, %v706_v53  ;;  %v1217_v38 = vld [vmem:[#allocation2 + $0x80] sm:$0xf0]  ;;  %v1109_v42 = vld [vmem:[#allocation2 + $0x84] sm:$0xf0] }
  0xe5   : > { %882 = vmatpush.bf16.msrb.mxu0 %v1100_v57  ;;  %896 = vmatpush.bf16.msrb.mxu1 %v1104_v59  ;;  %v369_v60 = vpop.permute.xlu0 %368  ;;  %v818_v61 = vsel %vm198_vm0, %v751_v17, 0 }
  0xe6   : > { %v237_v62 = vpop.permute.xlu1 %236  ;;  %v374_v1 = vrot.slane %v369_v60, 4  ;;  %393 = vst.msk [vmem:[#allocation2 + $0xd4] sm:$0xf] %vm171_vm8, %v369_v60 }
  0xe7   : > { %v242_v10 = vrot.slane %v237_v62, 4  ;;  %261 = vst.msk [vmem:[#allocation2 + $0x68] sm:$0xf] %vm171_vm8, %v237_v62 }
  0xe8   : > { %v382_v51 = vsel %vm198_vm0, %v373_v21, %v374_v1  ;;  %v1236_v27 = vld [vmem:[#allocation2 + $0x118] sm:$0xf0] }
  0xe9   : > { %v250_v7 = vsel %vm198_vm0, %v241_v5, %v242_v10  ;;  %v383_v11 = vsel %vm376_vm5, %v1544_v58, %v382_v51  ;;  %v1235_v15 = vld [vmem:[#allocation2 + $0x110] sm:$0xf0]  ;;  %v1181_v16 = vld [vmem:[#allocation2 + $0x114] sm:$0xf0]  ;;  %v1143_v5 = vld [vmem:[#allocation2 + $0xa8] sm:$0xf] }
  0xea   : > { %v251_v19 = vsel %vm244_vm6, %v1566_v28, %v250_v7  ;;  %392 = vst [vmem:[#allocation2 + $0xcc] sm:$0xff] %v383_v11  ;;  %v1207_v20 = vld [vmem:[#allocation2 + $0x30] sm:$0xf0]  ;;  %v1065_v22 = vld [vmem:[#allocation2 + $0x34] sm:$0xf0]  ;;  %v1180_v23 = vor.u32 %v1235_v15, %v1179_v6  ;;  %v1184_v21 = vor.u32 %v1231_v0, %v1181_v16 }
  0xeb   : > { %260 = vst [vmem:[#allocation2 + $0x60] sm:$0xff] %v251_v19  ;;  %v1064_v12 = vor.u32 %v1207_v20, %v1063_v2  ;;  %v1068_v25 = vor.u32 %v1203_v4, %v1065_v22  ;;  %v1187_v28 = vld [vmem:[#allocation2 + $0xf8] sm:$0xf] }
  0xec   : > { %908 = vmatpush.bf16.msrb.mxu2 %v1180_v23  ;;  %922 = vmatpush.bf16.msrb.mxu3 %v1184_v21  ;;  %v1188_v30 = vor.u32 %v1236_v27, %v1187_v28 }
  0xed   : > { %883 = vmatpush.bf16.msrb.mxu0 %v1064_v12  ;;  %897 = vmatpush.bf16.msrb.mxu1 %v1068_v25  ;;  %v192_v58 = vpop.permute.xlu0 %191  ;;  %v1227_v35 = vld [vmem:[#allocation2 + $0xd0] sm:$0xf0] }
  0xee   : > { %v197_v44 = vrot.slane %v192_v58, 4  ;;  %217 = vst.msk [vmem:[#allocation2 + $0x44] sm:$0xf] %vm171_vm8, %v192_v58  ;;  %v1152_v46 = vor.u32 %v1227_v35, %v1151_v34  ;;  %v1115_v47 = vld [vmem:[#allocation2 + $0x68] sm:$0xf] }
  0xef   : > { %v1116_v13 = vor.u32 %v1218_v41, %v1115_v47 }
  0xf0   : > { %v206_v29 = vsel %vm198_vm0, %v196_v50, %v197_v44  ;;  %1193 = vmatmul.msk.bf16.vlgmr.msrb.gmra.mxu0 %vm788_vm10, %v1515_v18  ;;  %1194 = vmatmul.msk.bf16.vlgmr.msrb.gmra.mxu1 %vm788_vm10, %v1515_v18  ;;  %v1079_v50 = vld [vmem:[#allocation2 + $0x20] sm:$0xf] }
  0xf1   : > { %935 = vmatpush.bf16.msra.mxu0 %v818_v61  ;;  %v207_v31 = vsel %vm200_vm9, %v1587_v49, %v206_v29  ;;  %v1226_v32 = vld [vmem:[#allocation2 + $0xc8] sm:$0xf0]  ;;  %v1145_v33 = vld [vmem:[#allocation2 + $0xcc] sm:$0xf0]  ;;  %v1204_v49 = vld [vmem:[#allocation2 + $0x1c] sm:$0xf] }
  0xf2   : > { %216 = vst [vmem:[#allocation2 + $0x3c] sm:$0xff] %v207_v31  ;;  %v1144_v37 = vor.u32 %v1226_v32, %v1143_v5  ;;  %v1148_v39 = vor.u32 %v1222_v3, %v1145_v33  ;;  %v1107_v43 = vld [vmem:[#allocation2 + $0x60] sm:$0xf]  ;;  %v1213_v45 = vld [vmem:[#allocation2 + $0x64] sm:$0xf] }
  0xf3   : > { %v1108_v63 = vor.u32 %v1217_v38, %v1107_v43  ;;  %v1112_v48 = vor.u32 %v1213_v45, %v1109_v42 }
  0xf4   : > { %909 = vmatpush.bf16.msrb.mxu2 %v1144_v37  ;;  %923 = vmatpush.bf16.msrb.mxu3 %v1148_v39 }
  0xf5   : > { %936 = vmatpush.bf16.msra.mxu0 %v1188_v30  ;;  %v1209_v52 = vld [vmem:[#allocation2 + $0x40] sm:$0xf0] }
  0xf6   : > { %v1080_v24 = vor.u32 %v1209_v52, %v1079_v50 }
  0xf8   : > { %910 = vmatpush.bf16.msrb.mxu2 %v1108_v63  ;;  %924 = vmatpush.bf16.msrb.mxu3 %v1112_v48 }
  0xf9   : > { %937 = vmatpush.bf16.msra.mxu0 %v1152_v46  ;;  %v1208_v26 = vld [vmem:[#allocation2 + $0x38] sm:$0xf0]  ;;  %v1073_v36 = vld [vmem:[#allocation2 + $0x3c] sm:$0xf0] }
  0xfa   : > { %v1072_v54 = vor.u32 %v1208_v26, %v1071_v40  ;;  %v1076_v55 = vor.u32 %v1204_v49, %v1073_v36 }
  0xfc   : > { %911 = vmatpush.bf16.msrb.mxu2 %v1072_v54  ;;  %925 = vmatpush.bf16.msrb.mxu3 %v1076_v55 }
  0xfd   : > { %938 = vmatpush.bf16.msra.mxu0 %v1116_v13 }
  0xff   : > { %1195 = vmatmul.msk.bf16.vlgmr.msrb.gmra.mxu2 %vm788_vm10, %v1515_v18  ;;  %1196 = vmatmul.msk.bf16.vlgmr.msrb.gmra.mxu3 %vm788_vm10, %v1515_v18 }
 0x101   : > { %939 = vmatpush.bf16.msra.mxu0 %v1080_v24 }
 0x104   : > { %1197 = vmatmul.msk.bf16.vlgmr.msra.gmra.mxu0 %vm788_vm10, %v1515_v18 }
 0x145   : > { %v829_v56 = vpop.f32.mrf.mxu0  ;;  %v843_v8 = vpop.f32.mrf.mxu1 }
 0x146   : > { %946 = vst [vmem:[%s1631_s5] sm:$0xff] %v829_v56 }
 0x147   : > { %947 = vst [vmem:[%s1631_s5 + $0x8] sm:$0xff] %v843_v8 }
 0x14d   : > { %v831_v18 = vpop.f32.mrf.mxu0  ;;  %v845_v9 = vpop.f32.mrf.mxu1 }
 0x14e   : > { %956 = vst [vmem:[%s1631_s5 + $0x48] sm:$0xff] %v831_v18 }
 0x14f   : > { %957 = vst [vmem:[%s1631_s5 + $0x50] sm:$0xff] %v845_v9 }
 0x15f   : > { %v857_v14 = vpop.f32.mrf.mxu2  ;;  %v871_v57 = vpop.f32.mrf.mxu3 }
 0x160   : > { %948 = vst [vmem:[%s1631_s5 + $0x10] sm:$0xff] %v857_v14 }
 0x161   : > { %949 = vst [vmem:[%s1631_s5 + $0x18] sm:$0xff] %v871_v57 }
 0x167   : > { %v859_v59 = vpop.f32.mrf.mxu2  ;;  %v873_v60 = vpop.f32.mrf.mxu3 }
 0x168   : > { %958 = vst [vmem:[%s1631_s5 + $0x58] sm:$0xff] %v859_v59 }
 0x169   : > { %959 = vst [vmem:[%s1631_s5 + $0x60] sm:$0xff] %v873_v60 }
 0x16d   : > { %v885_v53 = vpop.f32.mrf.mxu0  ;;  %v899_v62 = vpop.f32.mrf.mxu1 }
 0x16e   : > { %950 = vst [vmem:[%s1631_s5 + $0x20] sm:$0xff] %v885_v53 }
 0x16f   : > { %951 = vst [vmem:[%s1631_s5 + $0x28] sm:$0xff] %v899_v62 }
 0x175   : > { %v887_v1 = vpop.f32.mrf.mxu0  ;;  %v901_v10 = vpop.f32.mrf.mxu1 }
 0x176   : > { %960 = vst [vmem:[%s1631_s5 + $0x68] sm:$0xff] %v887_v1 }
 0x177   : > { %961 = vst [vmem:[%s1631_s5 + $0x70] sm:$0xff] %v901_v10 }
 0x181   : > { %v941_v51 = vpop.f32.mrf.mxu0 }
 0x182   : > { %955 = vst.msk [vmem:[%s1631_s5 + $0x40] sm:$0xff] %vm954_vm11, %v941_v51  ;;  %v913_v2 = vpop.f32.mrf.mxu2  ;;  %v927_v4 = vpop.f32.mrf.mxu3 }
 0x183   : > { %952 = vst [vmem:[%s1631_s5 + $0x30] sm:$0xff] %v913_v2 }
 0x184   : > { %953 = vst [vmem:[%s1631_s5 + $0x38] sm:$0xff] %v927_v4 }
 0x189   : > { %v943_v6 = vpop.f32.mrf.mxu0 }
 0x18a   : > { %964 = vst.msk [vmem:[%s1631_s5 + $0x88] sm:$0xff] %vm954_vm11, %v943_v6  ;;  %v915_v7 = vpop.f32.mrf.mxu2  ;;  %v929_v11 = vpop.f32.mrf.mxu3 }
 0x18b   : > { %962 = vst [vmem:[%s1631_s5 + $0x78] sm:$0xff] %v915_v7 }
 0x18c   : > { %963 = vst [vmem:[%s1631_s5 + $0x80] sm:$0xff] %v929_v11 }
 0x18d PF: > { %s13_s9 = sadd.s32 1, %s1308_s9  }
 0x18e   : > { %p10_p7 = scmp.ge.s32.totalorder %s13_s9, 4  }
 0x190   :  { %12 = sbr.rel (!%p10_p7) target bundleno = 1 (0x1), region = 63 }
 0x195   :  { %986 = vsyncpa [#allocation4], 1 }
 0x196   :  { %988 = vsyncpa [#allocation4 + $0x1], 1 }

</bundles_post_ra>
